<compile_context>
chip_gen: v6e
topology: v6e:2x2x1
jax: 0.10.0
libtpu: 0.0.40
codegen_flags: <defaults>
</compile_context>

<pallas_src>
import jax
import jax.numpy as jnp
from jax.experimental import pallas as pl
from jax.experimental.pallas import tpu as pltpu

# --- model dimensions (synthetic stand-ins for the CSV-derived sizes) ---
INPUT_DIM = 32        # train.drop('label').shape[1]
HIDDEN = 8            # hidden_layers = 8
OUTPUT_DIM = 10       # len(np.unique(train['label']))

PAD = 128             # lane-dense padded width for hidden / output features
BATCH = 128           # small example batch (2 grid tiles of 64 rows)


def mlp_kernel(x_ref, w1_ref, ws_ref, b_ref, o_ref):
    """relu(relu(relu(x@W1+b1)@W2+b2)@W3+b3)@W4+b4 on one [TB, *] batch tile.

    x tile is f32 [TB, INPUT_DIM] (cast to bf16 in-kernel); w1 is bf16
    [INPUT_DIM, PAD]; ws is bf16 [3, PAD, PAD] (W2, W3, W4); b is f32 [8, PAD]
    with rows 0..3 = b1..b4.  Matmuls run on the MXU with f32 accumulation;
    bias-add / ReLU stay f32 (portable to v5e).
    """
    x = x_ref[...].astype(jnp.bfloat16)

    h = jnp.dot(x, w1_ref[...], preferred_element_type=jnp.float32) + b_ref[0:1, :]
    h = jnp.maximum(h, 0.0)

    h = jnp.dot(h.astype(jnp.bfloat16), ws_ref[0],
                preferred_element_type=jnp.float32) + b_ref[1:2, :]
    h = jnp.maximum(h, 0.0)

    h = jnp.dot(h.astype(jnp.bfloat16), ws_ref[1],
                preferred_element_type=jnp.float32) + b_ref[2:3, :]
    h = jnp.maximum(h, 0.0)

    out = jnp.dot(h.astype(jnp.bfloat16), ws_ref[2],
                  preferred_element_type=jnp.float32) + b_ref[3:4, :]
    o_ref[...] = out.astype(o_ref.dtype)


def _grid_len(batch):
    # 2 tiles keeps both TensorCores fed on v7x; cost on single-TC v5e/v6e is
    # one extra ~0.35us grid step (noise).  Fall back to 1 tile otherwise.
    if batch % 16 == 0:
        return 2
    return 1


def network_forward(x, packed_params):
    """Fused MLP forward.  x: [B, INPUT_DIM] f32.

    Returns the lane-dense padded logits slab, bf16 [B, PAD]; only columns
    [:OUTPUT_DIM] are meaningful (the rest are exactly zero-padded weights, so
    consumers can mask or slice them -- no extra HBM pass here).
    """
    w1p, w_stack, b_stack = packed_params
    B = x.shape[0]
    # TODO(synk): add a masked remainder tile (or batch padding) for B % 8 != 0.
    assert B % 8 == 0, f"batch ({B}) must be a multiple of 8"

    g = _grid_len(B)
    tb = B // g

    out_padded = pl.pallas_call(
        mlp_kernel,
        out_shape=jax.ShapeDtypeStruct((B, PAD), jnp.bfloat16),
        grid=(g,),
        in_specs=[
            pl.BlockSpec((tb, INPUT_DIM), lambda i: (i, 0)),   # streamed per tile
            pl.BlockSpec((INPUT_DIM, PAD), lambda i: (0, 0)),  # resident
            pl.BlockSpec((3, PAD, PAD), lambda i: (0, 0, 0)),  # resident
            pl.BlockSpec((8, PAD), lambda i: (0, 0)),          # resident
        ],
        out_specs=pl.BlockSpec((tb, PAD), lambda i: (i, 0)),
        compiler_params=pltpu.CompilerParams(
            dimension_semantics=("parallel",)),
    )(x, w1p, w_stack, b_stack)

    return out_padded


def init_linear(key, fan_in, fan_out):
    """Mimic nn.Linear default init: U(-1/sqrt(fan_in), 1/sqrt(fan_in))."""
    kw, kb = jax.random.split(key)
    bound = 1.0 / jnp.sqrt(jnp.float32(fan_in))
    # stored as [in, out] so the kernel does x @ W (== PyTorch x @ W.T)
    w = jax.random.uniform(kw, (fan_in, fan_out), jnp.float32, -bound, bound)
    b = jax.random.uniform(kb, (fan_out,), jnp.float32, -bound, bound)
    return w, b


def pack_params(params):
    """Zero-pad feature dims to PAD lanes and pack into 3 kernel operands."""
    (w1, b1), (w2, b2), (w3, b3), (w4, b4) = params

    w1p = (jnp.zeros((INPUT_DIM, PAD), jnp.float32)
           .at[:, :HIDDEN].set(w1).astype(jnp.bfloat16))

    def pad_sq(w, fi, fo):
        return jnp.zeros((PAD, PAD), jnp.float32).at[:fi, :fo].set(w)

    w_stack = jnp.stack([
        pad_sq(w2, HIDDEN, HIDDEN),
        pad_sq(w3, HIDDEN, HIDDEN),
        pad_sq(w4, HIDDEN, OUTPUT_DIM),
    ]).astype(jnp.bfloat16)

    b_stack = jnp.zeros((8, PAD), jnp.float32)
    b_stack = b_stack.at[0, :HIDDEN].set(b1)
    b_stack = b_stack.at[1, :HIDDEN].set(b2)
    b_stack = b_stack.at[2, :HIDDEN].set(b3)
    b_stack = b_stack.at[3, :OUTPUT_DIM].set(b4)

    return w1p, w_stack, b_stack


def reference_forward_padded(x, packed_params):
    """Pure-JAX reference with identical bf16-matmul / f32-accumulate numerics."""
    w1p, w_stack, b_stack = packed_params
    h = jnp.maximum(jnp.dot(x.astype(jnp.bfloat16), w1p,
                            preferred_element_type=jnp.float32) + b_stack[0], 0.0)
    h = jnp.maximum(jnp.dot(h.astype(jnp.bfloat16), w_stack[0],
                            preferred_element_type=jnp.float32) + b_stack[1], 0.0)
    h = jnp.maximum(jnp.dot(h.astype(jnp.bfloat16), w_stack[1],
                            preferred_element_type=jnp.float32) + b_stack[2], 0.0)
    out = jnp.dot(h.astype(jnp.bfloat16), w_stack[2],
                  preferred_element_type=jnp.float32) + b_stack[3]
    return out  # f32 [B, PAD]


def reference_forward_f32(x, params):
    """Unpadded full-f32 reference (matches the PyTorch module semantics)."""
    (w1, b1), (w2, b2), (w3, b3), (w4, b4) = params
    h = jnp.maximum(x @ w1 + b1, 0.0)
    h = jnp.maximum(h @ w2 + b2, 0.0)
    h = jnp.maximum(h @ w3 + b3, 0.0)
    return h @ w4 + b4


if __name__ == "__main__":
    key = jax.random.PRNGKey(0)
    kx, k1, k2, k3, k4 = jax.random.split(key, 5)

    x = jax.random.normal(kx, (BATCH, INPUT_DIM), jnp.float32)
    params = (
        init_linear(k1, INPUT_DIM, HIDDEN),
        init_linear(k2, HIDDEN, HIDDEN),
        init_linear(k3, HIDDEN, HIDDEN),
        init_linear(k4, HIDDEN, OUTPUT_DIM),
    )
    packed_params = pack_params(params)

    out_padded = network_forward(x, packed_params)
    out_padded = jax.block_until_ready(out_padded)
    assert out_padded.shape == (BATCH, PAD)
    assert out_padded.dtype == jnp.bfloat16

    # Consumer-side view of the 10 logical class logits (slice happens here,
    # fused into whatever the downstream op is -- not inside the forward pass).
    logits = out_padded[:, :OUTPUT_DIM].astype(jnp.float32)

    # Padding lanes must be exactly zero (zero weights + zero bias + ReLU(0)=0).
    assert jnp.all(out_padded[:, OUTPUT_DIM:] == 0)

    # Tight check against a reference with identical bf16 matmul numerics
    # (reference output also rounded to bf16 to match the kernel's store dtype).
    ref_bf16 = reference_forward_padded(x, packed_params)[:, :OUTPUT_DIM]
    ref_bf16 = ref_bf16.astype(jnp.bfloat16).astype(jnp.float32)
    assert jnp.allclose(logits, ref_bf16, atol=1e-2, rtol=1e-2)

    # Loose sanity check against the full-f32 PyTorch-equivalent forward
    # (difference is only bf16 rounding of matmul operands and the output).
    ref_f32 = reference_forward_f32(x, params)
    assert jnp.allclose(logits, ref_f32, atol=1e-1, rtol=1e-1)

    print("KERNEL_OK")
</pallas_src>

<mosaic_0001>
module attributes {stable_mosaic.version = 11 : i64} {
  func.func @mlp_kernel(%arg0: i32, %arg1: memref<64x32xf32, #tpu.memory_space<vmem>>, %arg2: memref<32x128xbf16, #tpu.memory_space<vmem>>, %arg3: memref<3x128x128xbf16, #tpu.memory_space<vmem>>, %arg4: memref<8x128xf32, #tpu.memory_space<vmem>>, %arg5: memref<64x128xbf16, #tpu.memory_space<vmem>>) attributes {dimension_semantics = [#tpu.dimension_semantics<parallel>], iteration_bounds = array<i64: 2>, scalar_prefetch = 0 : i64, scratch_operands = 0 : i64, tpu.core_type = #tpu.core_type<tc>, window_params = [{transform_indices = @transform_0, window_bounds = array<i64: 64, 32>}, {pipeline_mode = #tpu.pipeline_mode<synchronous>, transform_indices = @transform_1, window_bounds = array<i64: 32, 128>}, {pipeline_mode = #tpu.pipeline_mode<synchronous>, transform_indices = @transform_2, window_bounds = array<i64: 3, 128, 128>}, {pipeline_mode = #tpu.pipeline_mode<synchronous>, transform_indices = @transform_3, window_bounds = array<i64: 8, 128>}, {transform_indices = @transform_4, window_bounds = array<i64: 64, 128>}]} {
    %c0 = arith.constant 0 : index
    %c0_0 = arith.constant 0 : index
    %0 = vector.load %arg1[%c0, %c0_0] : memref<64x32xf32, #tpu.memory_space<vmem>>, vector<64x32xf32>
    %1 = arith.truncf %0 : vector<64x32xf32> to vector<64x32xbf16>
    %c0_1 = arith.constant 0 : index
    %c0_2 = arith.constant 0 : index
    %2 = vector.load %arg2[%c0_1, %c0_2] : memref<32x128xbf16, #tpu.memory_space<vmem>>, vector<32x128xbf16>
    %cst = arith.constant dense<0.000000e+00> : vector<64x128xf32>
    %3 = tpu.matmul %1, %2, %cst {dimension_numbers = #tpu.dot_dimension_numbers<[1], [0], [0], [1], [0, 0, 1, 1], [], []>} : vector<64x32xbf16>, vector<32x128xbf16>, vector<64x128xf32> -> vector<64x128xf32>
    %c0_3 = arith.constant 0 : index
    %c0_4 = arith.constant 0 : index
    %4 = vector.load %arg4[%c0_3, %c0_4] : memref<8x128xf32, #tpu.memory_space<vmem>>, vector<1x128xf32>
    %5 = vector.broadcast %4 : vector<1x128xf32> to vector<64x128xf32>
    %6 = arith.addf %3, %5 : vector<64x128xf32>
    %cst_5 = arith.constant 0.000000e+00 : f32
    %7 = vector.broadcast %cst_5 : f32 to vector<64x128xf32>
    %8 = arith.maximumf %6, %7 : vector<64x128xf32>
    %9 = arith.truncf %8 : vector<64x128xf32> to vector<64x128xbf16>
    %c0_6 = arith.constant 0 : index
    %c0_7 = arith.constant 0 : index
    %c0_8 = arith.constant 0 : index
    %10 = vector.load %arg3[%c0_6, %c0_7, %c0_8] : memref<3x128x128xbf16, #tpu.memory_space<vmem>>, vector<1x128x128xbf16>
    %11 = vector.shape_cast %10 : vector<1x128x128xbf16> to vector<128x128xbf16>
    %cst_9 = arith.constant dense<0.000000e+00> : vector<64x128xf32>
    %12 = tpu.matmul %9, %11, %cst_9 {dimension_numbers = #tpu.dot_dimension_numbers<[1], [0], [0], [1], [0, 0, 1, 1], [], []>} : vector<64x128xbf16>, vector<128x128xbf16>, vector<64x128xf32> -> vector<64x128xf32>
    %c1 = arith.constant 1 : index
    %c0_10 = arith.constant 0 : index
    %13 = vector.load %arg4[%c1, %c0_10] : memref<8x128xf32, #tpu.memory_space<vmem>>, vector<1x128xf32>
    %14 = vector.broadcast %13 : vector<1x128xf32> to vector<64x128xf32>
    %15 = arith.addf %12, %14 : vector<64x128xf32>
    %cst_11 = arith.constant 0.000000e+00 : f32
    %16 = vector.broadcast %cst_11 : f32 to vector<64x128xf32>
    %17 = arith.maximumf %15, %16 : vector<64x128xf32>
    %18 = arith.truncf %17 : vector<64x128xf32> to vector<64x128xbf16>
    %c1_12 = arith.constant 1 : index
    %c0_13 = arith.constant 0 : index
    %c0_14 = arith.constant 0 : index
    %19 = vector.load %arg3[%c1_12, %c0_13, %c0_14] : memref<3x128x128xbf16, #tpu.memory_space<vmem>>, vector<1x128x128xbf16>
    %20 = vector.shape_cast %19 : vector<1x128x128xbf16> to vector<128x128xbf16>
    %cst_15 = arith.constant dense<0.000000e+00> : vector<64x128xf32>
    %21 = tpu.matmul %18, %20, %cst_15 {dimension_numbers = #tpu.dot_dimension_numbers<[1], [0], [0], [1], [0, 0, 1, 1], [], []>} : vector<64x128xbf16>, vector<128x128xbf16>, vector<64x128xf32> -> vector<64x128xf32>
    %c2 = arith.constant 2 : index
    %c0_16 = arith.constant 0 : index
    %22 = vector.load %arg4[%c2, %c0_16] : memref<8x128xf32, #tpu.memory_space<vmem>>, vector<1x128xf32>
    %23 = vector.broadcast %22 : vector<1x128xf32> to vector<64x128xf32>
    %24 = arith.addf %21, %23 : vector<64x128xf32>
    %cst_17 = arith.constant 0.000000e+00 : f32
    %25 = vector.broadcast %cst_17 : f32 to vector<64x128xf32>
    %26 = arith.maximumf %24, %25 : vector<64x128xf32>
    %27 = arith.truncf %26 : vector<64x128xf32> to vector<64x128xbf16>
    %c2_18 = arith.constant 2 : index
    %c0_19 = arith.constant 0 : index
    %c0_20 = arith.constant 0 : index
    %28 = vector.load %arg3[%c2_18, %c0_19, %c0_20] : memref<3x128x128xbf16, #tpu.memory_space<vmem>>, vector<1x128x128xbf16>
    %29 = vector.shape_cast %28 : vector<1x128x128xbf16> to vector<128x128xbf16>
    %cst_21 = arith.constant dense<0.000000e+00> : vector<64x128xf32>
    %30 = tpu.matmul %27, %29, %cst_21 {dimension_numbers = #tpu.dot_dimension_numbers<[1], [0], [0], [1], [0, 0, 1, 1], [], []>} : vector<64x128xbf16>, vector<128x128xbf16>, vector<64x128xf32> -> vector<64x128xf32>
    %c3 = arith.constant 3 : index
    %c0_22 = arith.constant 0 : index
    %31 = vector.load %arg4[%c3, %c0_22] : memref<8x128xf32, #tpu.memory_space<vmem>>, vector<1x128xf32>
    %32 = vector.broadcast %31 : vector<1x128xf32> to vector<64x128xf32>
    %33 = arith.addf %30, %32 : vector<64x128xf32>
    %34 = arith.truncf %33 : vector<64x128xf32> to vector<64x128xbf16>
    %c0_23 = arith.constant 0 : index
    %c0_24 = arith.constant 0 : index
    %35 = vector.load %arg5[%c0_23, %c0_24] : memref<64x128xbf16, #tpu.memory_space<vmem>>, vector<64x128xbf16>
    tpu.vector_store %arg5[%c0_23, %c0_24], %34 {strides = array<i32>} : memref<64x128xbf16, #tpu.memory_space<vmem>>, vector<64x128xbf16>,
    return
  }
  func.func @transform_0(%arg0: i32) -> (i32, i32) {
    %c0_i32 = arith.constant 0 : i32
    %c0_i32_0 = arith.constant 0 : i32
    return %arg0, %c0_i32 : i32, i32
  }
  func.func @transform_1(%arg0: i32) -> (i32, i32) {
    %c0_i32 = arith.constant 0 : i32
    %c0_i32_0 = arith.constant 0 : i32
    %c0_i32_1 = arith.constant 0 : i32
    return %c0_i32, %c0_i32_0 : i32, i32
  }
  func.func @transform_2(%arg0: i32) -> (i32, i32, i32) {
    %c0_i32 = arith.constant 0 : i32
    %c0_i32_0 = arith.constant 0 : i32
    %c0_i32_1 = arith.constant 0 : i32
    %c0_i32_2 = arith.constant 0 : i32
    return %c0_i32, %c0_i32_0, %c0_i32_1 : i32, i32, i32
  }
  func.func @transform_3(%arg0: i32) -> (i32, i32) {
    %c0_i32 = arith.constant 0 : i32
    %c0_i32_0 = arith.constant 0 : i32
    %c0_i32_1 = arith.constant 0 : i32
    return %c0_i32, %c0_i32_0 : i32, i32
  }
  func.func @transform_4(%arg0: i32) -> (i32, i32) {
    %c0_i32 = arith.constant 0 : i32
    %c0_i32_0 = arith.constant 0 : i32
    return %arg0, %c0_i32 : i32, i32
  }
}

</mosaic_0001>

<bundles_post_ra>
// kernel: tpu_custom_call.1
= control target key start
LH: loop header
LB: loop body
LE: loop exit
PB: predicated region body
PF: predicated region fallthrough
CT: control target
= control target key end

     0   :  { %9 = vsyncpa [#allocation3], 0  ;;  %s1456_s0 = inlined_call_operand.vmem [shape: f32[128,32], index: 0, kind: input, shape index: {}]   ;;  %s1457_s1 = inlined_call_operand.vmem [shape: bf16[32,128], index: 1, kind: input, shape index: {}]   ;;  %s1458_s2 = inlined_call_operand.hbm [shape: bf16[3,128,128], index: 2, kind: input, shape index: {}]   ;;  %s1459_s3 = inlined_call_operand.vmem [shape: f32[8,128], index: 3, kind: input, shape index: {}]   ;;  %s1460_s4 = inlined_call_operand.hbm [shape: bf16[128,128], index: 4, kind: output, shape index: {}]  }
   0x1   :  { %10 = vsyncpa [#allocation4], 0 }
   0x2   :  { %12 = vsyncpa [#allocation4 + $0x1], 0  ;;  %s1311_s15 = smov 0   ;;  %s1313_s16 = smov 0  }
   0x3   :  { %s1315_s17 = smov 0   ;;  %s1317_s18 = smov 0  }
   0x4 LB: > { %s1332_s19 = sadd.s32 4294967295, %s1278_s18   ;;  %s894_s20 = sadd.s32 4294967294, %s1278_s18   ;;  %s1278_s18 = sphi %s1317_s18, %s1468_s18   ;;  %s1274_s17 = sphi %s1315_s17, %s1467_s17   ;;  %s1270_s16 = sphi %s1313_s16, %s1466_s16   ;;  %s1266_s15 = sphi %s1311_s15, %s1465_s15  }
   0x5   : > { %s1336_s21 = sadd.s32 1, %s1278_s18   ;;  %s114_s22 = sadd.s32 1, %s1274_s17 }
   0x6   : > { %s111_s23 = ssub.s32 %s1278_s18, %s1336_s21  ;;  %p124_p0 = scmp.ne.s32.totalorder %s1274_s17, %s1270_s16 }
   0x7   : > { %p112_p1 = scmp.eq.s32.totalorder %s111_s23, 0  ;;  %p125_p2 = scmp.eq.s32.totalorder %s1332_s19, 1 }
   0x8   : > { %p130_p3 = scmp.ne.s32.totalorder %s1270_s16, %s1266_s15  ;;  %p131_p4 = scmp.eq.s32.totalorder %s894_s20, 1 }
   0x9   : > { %s1347_s24 = scalar_select %p112_p1, %s1274_s17, %s114_s22  }
   0xa   : > { %p1349_p5 = por %p125_p2, %p124_p0  ;;  %p1353_p6 = por %p131_p4, %p130_p3 }
   0xb   : > { %p895_p7 = scmp.ge.s32.totalorder %s1278_s18, 1  ;;  %p138_p8 = scmp.lt.s32.totalorder %s1278_s18, 3 }
   0xc   : > { %s1462_s26 = scalar_select %p1353_p6, 1, 0 }
   0xd   : > { %p1122_p9 = scmp.eq.s32.totalorder %s1332_s19, 0  ;;  %p1360_p10 = pnand %p895_p7, %p138_p8 }
   0xe   : > { %s1280_s28 = smov [#allocation2]  }
   0xf   : > { %s153_s29 = sshll.u32 %s1280_s28, 4  ;;  %p1114_p11 = pneg %p1360_p10  ;;  %s154_s29 = int_to_ptr.vmem [resolvable:$true] %s153_s29 }
  0x10   : > { %s1199_s30 = scalar_lea.vmem %s154_s29, 3072  ;;  %p1207_p3 = scmp.lt.s32.totalorder %s154_s29, %s154_s29 }
  0x11   : > { %p1115_p12 = pnand %p1122_p9, %p1114_p11  ;;  %p1200_p0 = scmp.ne.s32.totalorder %s154_s29, %s1199_s30 }
  0x12   : > { %p1208_p4 = scmp.lt.s32.totalorder %s1199_s30, %s1199_s30 }
  0x13   : > { %p1190_p13 = pneg %p1115_p12 }
  0x14   : > { %p1209_p6 = por %p1208_p4, %p1207_p3 }
  0x15   : > { %p1202_p1 = pnand %p1200_p0, %p1190_p13 }
  0x17   : > { %p1203_p2 = pneg %p1202_p1 }
  0x19   : > { %p1210_p7 = pnand %p1209_p6, %p1203_p2 }
  0x1b   : > { %1213 = shalt.err (!%p1210_p7)
}
  0x1c   : > { %s1281_s5 = smov 64   ;;  %s1282_s6 = smov 4  }
  0x1d   : > { %1117 = dma.hbm_to_vmem [thread:$0]  (!%p1115_p12), %s1458_s2, 3072, %s154_s29, [#allocation3], %s1281_s5, %s1281_s5, %s1282_s6  }
  0x1e   : > { %181 = sbr.rel (%p1360_p10) target bundleno = 889 (0x379), region = 36 }
  0x23   : > { %1257 = dma.done.wait (%p1122_p9), [#allocation3], 3072  }
  0x24   : > { %1259 = vsyncadd (%p1122_p9), [#allocation3], 4294964224  ;;  %s901_s9 = sshll.u32 %s1332_s19, 3  ;;  %v1162_v0 = vld [vmem:[%s1457_s1 + $0x8] sm:$0xff]   ;;  %v1163_v1 = vld [vmem:[%s1457_s1] sm:$0xff]   ;;  %vm248_vm0 = vcmask 261120  }
  0x25   : > { %p208_p8 = scmp.lt.s32.totalorder %s901_s9, 15  ;;  %1024 = vmatprep.subr.bf16.mxu0 %v1162_v0  ;;  %v1164_v9 = vld [vmem:[#allocation2 + $0x38] sm:$0xff]   ;;  %v1165_v11 = vld [vmem:[#allocation2 + $0x30] sm:$0xff]   ;;  %v1166_v15 = vld [vmem:[#allocation2 + $0x28] sm:$0xff]   ;;  %s204_s7 = sand.u32 1, %s1270_s16  }
  0x26   : > { %1025 = vmatpush3.bf16.msra.mxu0 %v1162_v0  ;;  %1036 = vmatprep.subr.bf16.mxu1 %v1164_v9  ;;  %v1167_v16 = vld [vmem:[#allocation2 + $0x20] sm:$0xff]   ;;  %v1168_v18 = vld [vmem:[#allocation2 + $0x18] sm:$0xff]   ;;  %v1169_v19 = vld [vmem:[#allocation2 + $0x10] sm:$0xff]   ;;  %s1416_s23 = scalar_lea.sflag [#allocation4], %s204_s7  ;;  %s1283_s27 = smov [#allocation5]  }
  0x27   : > { %s1470_s9 = smov (!%p208_p8, %s901_s9), 15  ;;  %1026 = vmatprep.subr.bf16.mxu0 %v1163_v1  ;;  %1037 = vmatpush3.bf16.msra.mxu1 %v1164_v9  ;;  %v1170_v20 = vld [vmem:[#allocation2 + $0x8] sm:$0xff]   ;;  %v1171_v21 = vld [vmem:[#allocation2] sm:$0xff]   ;;  %v1172_v22 = vld [vmem:[#allocation2 + $0x78] sm:$0xff]   ;;  %s1218_s28 = sshll.u32 %s1283_s27, 4  ;;  %s1219_s28 = int_to_ptr.vmem [resolvable:$false] %s1218_s28 }
  0x28   : > { %s902_s10 = sshll.u32 %s1470_s9, 3  ;;  %1038 = vmatprep.subr.bf16.mxu1 %v1165_v11  ;;  %v1173_v23 = vld [vmem:[#allocation2 + $0x70] sm:$0xff]   ;;  %v1174_v24 = vld [vmem:[#allocation2 + $0x68] sm:$0xff]   ;;  %v1175_v25 = vld [vmem:[#allocation2 + $0x60] sm:$0xff]   ;;  %s1220_s29 = scalar_lea.vmem %s1219_s28, 1024 }
  0x29   : > { %s211_s13 = scalar_lea.vmem %s1456_s0, %s902_s10  ;;  %v1176_v26 = vld [vmem:[#allocation2 + $0x58] sm:$0xff]   ;;  %v903_v29 = vld [vmem:[%s1459_s3] ss:$0 sm:$0xff]  ;;  %v1177_v56 = vld [vmem:[#allocation2 + $0x50] sm:$0xff]   ;;  %s900_s10 = sshll.u32 %s204_s7, 5 }
  0x2a   : > { %v215_v2 = vld [vmem:[%s211_s13] sm:$0xff]  ;;  %v216_v3 = vld [vmem:[%s211_s13 + $0x8] sm:$0xff]  ;;  %v217_v5 = vld [vmem:[%s211_s13 + $0x10] sm:$0xff]  ;;  %1027 = vmatpush3.bf16.msra.mxu0 %v1163_v1  ;;  %s206_s11 = scalar_lea.vmem [#allocation5], %s900_s10 }
  0x2b   : > { %v223_v4 = vpack.c.bf16 %v216_v3, %v215_v2  ;;  %v218_v6 = vld [vmem:[%s211_s13 + $0x18] sm:$0xff]  ;;  %v219_v7 = vld [vmem:[%s211_s13 + $0x20] sm:$0xff]  ;;  %v220_v8 = vld [vmem:[%s211_s13 + $0x28] sm:$0xff]  ;;  %1039 = vmatpush3.bf16.msra.mxu1 %v1165_v11  ;;  %1060 = vmatprep.subr.bf16.mxu0 %v1172_v22  ;;  %s820_s12 = sshll.u32 %s206_s11, 4  ;;  %s1407_s12 = int_to_ptr.vmem [resolvable:$true] %s820_s12 }
  0x2c   : > { %v224_v10 = vpack.c.bf16 %v218_v6, %v217_v5  ;;  %v225_v12 = vpack.c.bf16 %v220_v8, %v219_v7  ;;  %v221_v13 = vld [vmem:[%s211_s13 + $0x30] sm:$0xff]  ;;  %v222_v14 = vld [vmem:[%s211_s13 + $0x38] sm:$0xff]  ;;  %1040 = vmatprep.subr.bf16.mxu1 %v1166_v15  ;;  %v1178_v57 = vld [vmem:[#allocation2 + $0x48] sm:$0xff]   ;;  %s958_s13 = sshll.u32 %s1332_s19, 9  ;;  %s1214_s19 = scalar_lea.vmem %s1407_s12, 512 }
  0x2d   : > { %1028 = vmatprep.mubr.msk.bf16.mxu0 %vm248_vm0, %v223_v4  ;;  %v226_v17 = vpack.c.bf16 %v222_v14, %v221_v13  ;;  %v1179_v58 = vld [vmem:[#allocation2 + $0x40] sm:$0xff]   ;;  %v1180_v59 = vld [vmem:[#allocation2 + $0xb8] sm:$0xff]   ;;  %v1181_v60 = vld [vmem:[#allocation2 + $0xb0] sm:$0xff]   ;;  %s1412_s22 = scalar_lea.hbm %s1460_s4, %s958_s13  ;;  %p1215_p6 = scmp.ne.s32.totalorder %s1407_s12, %s1214_s19 }
  0x2e   : > { %1029 = vmatmul.mubr.msk.bf16.vlgmr.msra.gmra.mxu0 %vm248_vm0, %v224_v10  ;;  %v1182_v61 = vld [vmem:[#allocation2 + $0xa8] sm:$0xff]   ;;  %v1183_v62 = vld [vmem:[#allocation2 + $0xa0] sm:$0xff]   ;;  %v1184_v63 = vld [vmem:[#allocation2 + $0x98] sm:$0xff]   ;;  %p1221_p11 = scmp.lt.s32.totalorder %s1407_s12, %s1219_s28  ;;  %p1222_p12 = scmp.lt.s32.totalorder %s1220_s29, %s1214_s19 }
  0x2f   : > { %1032 = vmatprep.mubr.msk.bf16.mxu0 %vm248_vm0, %v225_v12  ;;  %1041 = vmatpush3.bf16.msra.mxu1 %v1166_v15  ;;  %v910_v2 = vld [vmem:[%s1459_s3 + $0x1] ss:$0 sm:$0xff]  ;;  %p1216_p9 = pnand %p1215_p6, %p1349_p5 }
  0x30   : > { %1042 = vmatprep.subr.bf16.mxu1 %v1167_v16  ;;  %1061 = vmatpush3.bf16.msra.mxu0 %v1172_v22  ;;  %p1223_p13 = por %p1222_p12, %p1221_p11 }
  0x31   : > { %1062 = vmatprep.subr.bf16.mxu0 %v1173_v23  ;;  %p1217_p10 = pneg %p1216_p9 }
  0x33   : > { %1043 = vmatpush3.bf16.msra.mxu1 %v1167_v16  ;;  %p1224_p0 = pnand %p1223_p13, %p1217_p10 }
  0x34   : > { %1044 = vmatprep.subr.bf16.mxu1 %v1168_v18  ;;  %1063 = vmatpush3.bf16.msra.mxu0 %v1173_v23 }
  0x35   : > { %1064 = vmatprep.subr.bf16.mxu0 %v1174_v24 }
  0x36   : > { %1033 = vmatmul.mubr.msk.bf16.gmra.mxu0 %vm248_vm0, %v226_v17 }
  0x37   : > { %1045 = vmatpush3.bf16.msra.mxu1 %v1168_v18 }
  0x38   : > { %1046 = vmatprep.subr.bf16.mxu1 %v1169_v19  ;;  %1065 = vmatpush3.bf16.msra.mxu0 %v1174_v24 }
  0x39   : > { %1066 = vmatprep.subr.bf16.mxu0 %v1175_v25 }
  0x3b   : > { %1047 = vmatpush3.bf16.msra.mxu1 %v1169_v19 }
  0x3c   : > { %1048 = vmatprep.subr.bf16.mxu1 %v1170_v20  ;;  %1067 = vmatpush3.bf16.msra.mxu0 %v1175_v25 }
  0x3d   : > { %1068 = vmatprep.subr.bf16.mxu0 %v1176_v26 }
  0x3f   : > { %1049 = vmatpush3.bf16.msra.mxu1 %v1170_v20 }
  0x40   : > { %1050 = vmatprep.subr.bf16.mxu1 %v1171_v21  ;;  %1069 = vmatpush3.bf16.msra.mxu0 %v1176_v26 }
  0x41   : > { %1070 = vmatprep.subr.bf16.mxu0 %v1177_v56 }
  0x43   : > { %1051 = vmatpush3.bf16.msra.mxu1 %v1171_v21 }
  0x44   : > { %1071 = vmatpush3.bf16.msra.mxu0 %v1177_v56  ;;  %1084 = vmatprep.subr.bf16.mxu1 %v1180_v59 }
  0x45   : > { %1072 = vmatprep.subr.bf16.mxu0 %v1178_v57 }
  0x48   : > { %1073 = vmatpush3.bf16.msra.mxu0 %v1178_v57 }
  0x49   : > { %1074 = vmatprep.subr.bf16.mxu0 %v1179_v58 }
  0x4c   : > { %1075 = vmatpush3.bf16.msra.mxu0 %v1179_v58 }
  0xee   : > { %v1030_v27 = vpop.f32.mrf.mxu0 }
  0xef   : > { %v304_v33 = vadd.f32 %v1030_v27, %v903_v29 }
  0xf0   : > { %v295_v28 = vpop.f32.mrf.mxu0 }
  0xf1   : > { %v296_v31 = vadd.f32 %v903_v29, %v295_v28  ;;  %v328_v40 = vmax.f32 %v304_v33, 0.0 }
  0xf2   : > { %v1031_v30 = vpop.f32.mrf.mxu0 }
  0xf3   : > { %v307_v32 = vadd.f32 %v1031_v30, %v903_v29  ;;  %v326_v38 = vmax.f32 %v296_v31, 0.0  ;;  %v1186_v30 = vld [vmem:[#allocation2 + $0x88] sm:$0xff]   ;;  %v1187_v31 = vld [vmem:[#allocation2 + $0x80] sm:$0xff]  }
  0xf4   : > { %v298_v34 = vpop.f32.mrf.mxu0 }
  0xf5   : > { %v299_v35 = vadd.f32 %v903_v29, %v298_v34  ;;  %v329_v36 = vmax.f32 %v307_v32, 0.0  ;;  %v919_v34 = vld [vmem:[%s1459_s3 + $0x2] ss:$0 sm:$0xff] }
  0xf6   : > { %v1034_v37 = vpop.f32.mrf.mxu0 }
  0xf7   : > { %v327_v39 = vmax.f32 %v299_v35, 0.0  ;;  %v335_v43 = vpack.c.bf16 %v329_v36, %v328_v40  ;;  %v320_v47 = vadd.f32 %v1034_v37, %v903_v29 }
  0xf8   : > { %v311_v41 = vpop.f32.mrf.mxu0 }
  0xf9   : > { %v334_v42 = vpack.c.bf16 %v327_v39, %v326_v38  ;;  %v312_v45 = vadd.f32 %v903_v29, %v311_v41  ;;  %v332_v53 = vmax.f32 %v320_v47, 0.0 }
  0xfa   : > { %v1035_v44 = vpop.f32.mrf.mxu0 }
  0xfb   : > { %v323_v46 = vadd.f32 %v1035_v44, %v903_v29  ;;  %1052 = vmatprep.mubr.bf16.mxu1 %v334_v42  ;;  %v330_v51 = vmax.f32 %v312_v45, 0.0 }
  0xfc   : > { %v314_v48 = vpop.f32.mrf.mxu0  ;;  %1053 = vmatmul.mubr.bf16.vlgmr.msra.gmra.mxu1 %v335_v43 }
  0xfd   : > { %v315_v49 = vadd.f32 %v903_v29, %v314_v48  ;;  %v333_v50 = vmax.f32 %v323_v46, 0.0  ;;  %1085 = vmatpush3.bf16.msra.mxu1 %v1180_v59  ;;  %v1185_v29 = vld [vmem:[#allocation2 + $0x90] sm:$0xff]  }
  0xfe   : > { %1086 = vmatprep.subr.bf16.mxu1 %v1181_v60 }
  0xff   : > { %v331_v52 = vmax.f32 %v315_v49, 0.0  ;;  %v337_v55 = vpack.c.bf16 %v333_v50, %v332_v53 }
 0x101   : > { %v336_v54 = vpack.c.bf16 %v331_v52, %v330_v51  ;;  %1087 = vmatpush3.bf16.msra.mxu1 %v1181_v60 }
 0x102   : > { %1088 = vmatprep.subr.bf16.mxu1 %v1182_v61 }
 0x103   : > { %1056 = vmatprep.mubr.bf16.mxu1 %v336_v54 }
 0x104   : > { %1057 = vmatmul.mubr.bf16.gmra.mxu1 %v337_v55 }
 0x105   : > { %1089 = vmatpush3.bf16.msra.mxu1 %v1182_v61 }
 0x106   : > { %1090 = vmatprep.subr.bf16.mxu1 %v1183_v62 }
 0x109   : > { %1091 = vmatpush3.bf16.msra.mxu1 %v1183_v62  ;;  %v928_v62 = vld [vmem:[%s1459_s3 + $0x3] ss:$0 sm:$0xff] }
 0x10a   : > { %1092 = vmatprep.subr.bf16.mxu1 %v1184_v63 }
 0x10d   : > { %1093 = vmatpush3.bf16.msra.mxu1 %v1184_v63 }
 0x10e   : > { %1094 = vmatprep.subr.bf16.mxu1 %v1185_v29 }
 0x111   : > { %1095 = vmatpush3.bf16.msra.mxu1 %v1185_v29 }
 0x112   : > { %1096 = vmatprep.subr.bf16.mxu1 %v1186_v30 }
 0x115   : > { %1097 = vmatpush3.bf16.msra.mxu1 %v1186_v30 }
 0x116   : > { %1098 = vmatprep.subr.bf16.mxu1 %v1187_v31 }
 0x119   : > { %1099 = vmatpush3.bf16.msra.mxu1 %v1187_v31 }
 0x1bc   : > { %v1054_v0 = vpop.f32.mrf.mxu1 }
 0x1bd   : > { %v450_v6 = vadd.f32 %v1054_v0, %v910_v2 }
 0x1be   : > { %v441_v1 = vpop.f32.mrf.mxu1 }
 0x1bf   : > { %v442_v4 = vadd.f32 %v910_v2, %v441_v1  ;;  %v474_v13 = vmax.f32 %v450_v6, 0.0 }
 0x1c0   : > { %v1055_v3 = vpop.f32.mrf.mxu1 }
 0x1c1   : > { %v453_v5 = vadd.f32 %v1055_v3, %v910_v2  ;;  %v472_v11 = vmax.f32 %v442_v4, 0.0 }
 0x1c2   : > { %v444_v7 = vpop.f32.mrf.mxu1 }
 0x1c3   : > { %v445_v8 = vadd.f32 %v910_v2, %v444_v7  ;;  %v475_v9 = vmax.f32 %v453_v5, 0.0 }
 0x1c4   : > { %v1058_v10 = vpop.f32.mrf.mxu1 }
 0x1c5   : > { %v473_v12 = vmax.f32 %v445_v8, 0.0  ;;  %v481_v16 = vpack.c.bf16 %v475_v9, %v474_v13  ;;  %v466_v20 = vadd.f32 %v1058_v10, %v910_v2 }
 0x1c6   : > { %v457_v14 = vpop.f32.mrf.mxu1 }
 0x1c7   : > { %v480_v15 = vpack.c.bf16 %v473_v12, %v472_v11  ;;  %v458_v18 = vadd.f32 %v910_v2, %v457_v14  ;;  %v478_v26 = vmax.f32 %v466_v20, 0.0 }
 0x1c8   : > { %v1059_v17 = vpop.f32.mrf.mxu1 }
 0x1c9   : > { %v469_v19 = vadd.f32 %v1059_v17, %v910_v2  ;;  %1076 = vmatprep.mubr.bf16.mxu0 %v480_v15  ;;  %v476_v24 = vmax.f32 %v458_v18, 0.0 }
 0x1ca   : > { %v460_v21 = vpop.f32.mrf.mxu1  ;;  %1077 = vmatmul.mubr.bf16.vlgmr.msra.gmra.mxu0 %v481_v16 }
 0x1cb   : > { %v461_v22 = vadd.f32 %v910_v2, %v460_v21  ;;  %v479_v23 = vmax.f32 %v469_v19, 0.0 }
 0x1cd   : > { %v477_v25 = vmax.f32 %v461_v22, 0.0  ;;  %v483_v28 = vpack.c.bf16 %v479_v23, %v478_v26 }
 0x1cf   : > { %v482_v27 = vpack.c.bf16 %v477_v25, %v476_v24 }
 0x1d1   : > { %1080 = vmatprep.mubr.bf16.mxu0 %v482_v27 }
 0x1d2   : > { %1081 = vmatmul.mubr.bf16.gmra.mxu0 %v483_v28 }
 0x28a   : > { %v1078_v32 = vpop.f32.mrf.mxu0 }
 0x28b   : > { %v597_v38 = vadd.f32 %v1078_v32, %v919_v34 }
 0x28c   : > { %v588_v33 = vpop.f32.mrf.mxu0 }
 0x28d   : > { %v589_v36 = vadd.f32 %v919_v34, %v588_v33  ;;  %v621_v45 = vmax.f32 %v597_v38, 0.0 }
 0x28e   : > { %v1079_v35 = vpop.f32.mrf.mxu0 }
 0x28f   : > { %v600_v37 = vadd.f32 %v1079_v35, %v919_v34  ;;  %v619_v43 = vmax.f32 %v589_v36, 0.0 }
 0x290   : > { %v591_v39 = vpop.f32.mrf.mxu0 }
 0x291   : > { %v592_v40 = vadd.f32 %v919_v34, %v591_v39  ;;  %v622_v41 = vmax.f32 %v600_v37, 0.0 }
 0x292   : > { %v1082_v42 = vpop.f32.mrf.mxu0 }
 0x293   : > { %v620_v44 = vmax.f32 %v592_v40, 0.0  ;;  %v628_v48 = vpack.c.bf16 %v622_v41, %v621_v45  ;;  %v613_v52 = vadd.f32 %v1082_v42, %v919_v34 }
 0x294   : > { %v604_v46 = vpop.f32.mrf.mxu0 }
 0x295   : > { %v627_v47 = vpack.c.bf16 %v620_v44, %v619_v43  ;;  %v605_v50 = vadd.f32 %v919_v34, %v604_v46  ;;  %v625_v58 = vmax.f32 %v613_v52, 0.0 }
 0x296   : > { %v1083_v49 = vpop.f32.mrf.mxu0 }
 0x297   : > { %v616_v51 = vadd.f32 %v1083_v49, %v919_v34  ;;  %1100 = vmatprep.mubr.bf16.mxu1 %v627_v47  ;;  %v623_v56 = vmax.f32 %v605_v50, 0.0 }
 0x298   : > { %v607_v53 = vpop.f32.mrf.mxu0  ;;  %1101 = vmatmul.mubr.bf16.vlgmr.msra.gmra.mxu1 %v628_v48 }
 0x299   : > { %v608_v54 = vadd.f32 %v919_v34, %v607_v53  ;;  %v626_v55 = vmax.f32 %v616_v51, 0.0 }
 0x29b   : > { %v624_v57 = vmax.f32 %v608_v54, 0.0  ;;  %v630_v60 = vpack.c.bf16 %v626_v55, %v625_v58 }
 0x29d   : > { %v629_v59 = vpack.c.bf16 %v624_v57, %v623_v56 }
 0x29f   : > { %1104 = vmatprep.mubr.bf16.mxu1 %v629_v59 }
 0x2a0   : > { %1105 = vmatmul.mubr.bf16.gmra.mxu1 %v630_v60 }
 0x358   : > { %v1102_v61 = vpop.f32.mrf.mxu1 }
 0x359   : > { %v744_v1 = vadd.f32 %v1102_v61, %v928_v62 }
 0x35a   : > { %v735_v63 = vpop.f32.mrf.mxu1 }
 0x35b   : > { %v736_v4 = vadd.f32 %v928_v62, %v735_v63 }
 0x35c   : > { %v1103_v0 = vpop.f32.mrf.mxu1 }
 0x35d   : > { %v747_v2 = vadd.f32 %v1103_v0, %v928_v62 }
 0x35e   : > { %v738_v3 = vpop.f32.mrf.mxu1 }
 0x35f   : > { %v967_v5 = vpack.c.bf16 %v747_v2, %v744_v1  ;;  %v739_v6 = vadd.f32 %v928_v62, %v738_v3 }
 0x360   : > { %v1106_v7 = vpop.f32.mrf.mxu1 }
 0x361   : > { %979 = vst [vmem:[%s206_s11 + $0x8] sm:$0xff] %v967_v5   ;;  %v962_v8 = vpack.c.bf16 %v739_v6, %v736_v4  ;;  %v760_v11 = vadd.f32 %v1106_v7, %v928_v62 }
 0x362   : > { %v751_v9 = vpop.f32.mrf.mxu1 }
 0x363   : > { %963 = vst [vmem:[%s206_s11] sm:$0xff] %v962_v8   ;;  %v752_v14 = vadd.f32 %v928_v62, %v751_v9 }
 0x364   : > { %v1107_v10 = vpop.f32.mrf.mxu1 }
 0x365   : > { %v763_v12 = vadd.f32 %v1107_v10, %v928_v62 }
 0x366   : > { %v754_v13 = vpop.f32.mrf.mxu1 }
 0x367   : > { %v977_v15 = vpack.c.bf16 %v763_v12, %v760_v11  ;;  %v755_v16 = vadd.f32 %v928_v62, %v754_v13 }
 0x369   : > { %981 = vst [vmem:[%s206_s11 + $0x18] sm:$0xff] %v977_v15   ;;  %v972_v17 = vpack.c.bf16 %v755_v16, %v752_v14 }
 0x36b   : > { %980 = vst [vmem:[%s206_s11 + $0x10] sm:$0xff] %v972_v17  }
 0x36c   : > { %1227 = shalt.err (!%p1224_p0)
}
 0x36d   : > { %s1228_s30 = scalar_lea.hbm %s1412_s22, 512  ;;  %s1232_s7 = scalar_lea.hbm %s1460_s4, 1024 }
 0x36e   : > { %p1229_p1 = scmp.ne.s32.totalorder %s1412_s22, %s1228_s30  ;;  %p1233_p4 = scmp.lt.s32.totalorder %s1412_s22, %s1460_s4 }
 0x36f   : > { %p1234_p7 = scmp.lt.s32.totalorder %s1232_s7, %s1228_s30 }
 0x370   : > { %p1230_p2 = pnand %p1229_p1, %p1349_p5 }
 0x371   : > { %p1235_p8 = por %p1234_p7, %p1233_p4 }
 0x372   : > { %p1231_p3 = pneg %p1230_p2 }
 0x374   : > { %p1236_p6 = pnand %p1235_p8, %p1231_p3 }
 0x376   : > { %1239 = shalt.err (!%p1236_p6)
}
 0x377   : > { %s1284_s10 = smov 64   ;;  %s1285_s11 = smov 4  }
 0x378   : > { %1112 = dma.vmem_to_hbm [thread:$0]  (%p1349_p5), %s1407_s12, 512, %s1412_s22, %s1416_s23, %s1284_s10, %s1284_s10, %s1285_s11  }
 0x379 PF: > { %p1124_p9 = scmp.ge.s32.totalorder %s1278_s18, 2  ;;  %s835_s13 = sand.u32 1, %s1266_s15  }
 0x37a   : > { %p1464_p10 = scmp.ne.s32.totalorder %s1462_s26, 0  ;;  %s836_s14 = scalar_lea.sflag [#allocation4], %s835_s13 }
 0x37c   : > { %p1119_p11 = pnand %p1124_p9, %p1464_p10 }
 0x37e   : > { %p1120_p12 = pneg %p1119_p11 }
 0x380   : > { %1261 = dma.done.wait (%p1120_p12), %s836_s14, 512  }
 0x381   : > { %1263 = vsyncadd (%p1120_p12), %s836_s14, 4294966784  ;;  %p15_p13 = scmp.ge.s32.totalorder %s1336_s21, 4   ;;  %s1465_s15 = smov %s1270_s16 }
 0x382   : > { %s1466_s16 = smov %s1274_s17  ;;  %s1467_s17 = smov %s1347_s24 }
 0x383   : > { %s1468_s18 = smov %s1336_s21  ;;  %17 = sbr.rel (!%p15_p13) target bundleno = 4 (0x4), region = 78 }
 0x388   :  { %841 = vsyncpa [#allocation3], 1 }
 0x389   :  { %843 = vsyncpa [#allocation3 + $0x1], 1 }
 0x38a   :  { %844 = vsyncpa [#allocation4], 1 }
 0x38b   :  { %846 = vsyncpa [#allocation4 + $0x1], 1 }

</bundles_post_ra>
